<compile_context>
chip_gen: v6e
topology: v6e:2x2x1
jax: 0.10.0
libtpu: 0.0.40
codegen_flags: <defaults>
</compile_context>

<pallas_src>
import jax
import jax.numpy as jnp
from jax.experimental import pallas as pl
from jax.experimental.pallas import tpu as pltpu


def clf_head_kernel(x_ref, w1_ref, b1_ref, w2_ref, b2_ref, o_ref):
    # x_ref:  (TB, D)    w1_ref: (D, H)    b1_ref: (1, H)    w2_ref: (1, H)
    # b2_ref: (1, 1) scalar in SMEM        o_ref:  (1, 1, TB)  (batch on lanes)
    x = x_ref[...]

    # ---- lin1 + ReLU: MXU matmul, f32 accumulation, f32 elementwise ----
    h = jnp.dot(x, w1_ref[...], preferred_element_type=jnp.float32)
    h = jnp.maximum(h + b1_ref[...].astype(jnp.float32), 0.0)        # (TB, H) f32

    # ---- lin2: contract hidden dim of (1, H) against hidden dim of (TB, H).
    # The batch ends up on the lane axis as a (1, TB) row -> dense store,
    # no (H, 1) column matmul and no masked 1-lane vst per row.
    y = jax.lax.dot_general(
        w2_ref[...].astype(jnp.float32), h,
        dimension_numbers=(((1,), (1,)), ((), ())),
        preferred_element_type=jnp.float32,
    )                                                                 # (1, TB)
    y = y + b2_ref[0, 0].astype(jnp.float32)

    o_ref[...] = y[None].astype(o_ref.dtype)                          # (1, 1, TB)


def clf_head(x, w1, b1, w2, b2, *, tile_b=None, vmem_limit_bytes=32 * 1024 * 1024):
    """Fused ClfHead forward.

    x:  (B, D)
    w1: (D, H)  = lin1.weight.T     b1: (H,) = lin1.bias
    w2: (H, 1)  = lin2.weight.T     b2: (1,) = lin2.bias
    Returns (B, 1), matching lin2(relu(lin1(x))).
    """
    B, D = x.shape
    H = w1.shape[1]

    # Large, sublane-aligned batch tile with >= 2 grid steps when possible so
    # the x DMA pipelines and (on v7x) the batch axis shards across both TCs.
    if tile_b is None:
        tile_b = min(512, max(8, (B // 2 // 8) * 8))
    tile_b = int(min(tile_b, B))
    if tile_b < B and tile_b % 8 != 0:
        tile_b = max(8, (tile_b // 8) * 8)
        tile_b = min(tile_b, B)
    num_tiles = pl.cdiv(B, tile_b)

    b1_2d = b1.reshape(1, H)
    w2_row = w2.reshape(1, H)          # (H, 1) -> (1, H)
    b2_2d = b2.reshape(1, 1)

    # TODO(synk): for very large D/H, tile W1 over the D (reduction) axis with
    # a VMEM f32 accumulator instead of keeping it fully resident.
    out = pl.pallas_call(
        clf_head_kernel,
        out_shape=jax.ShapeDtypeStruct((num_tiles, 1, tile_b), x.dtype),
        grid=(num_tiles,),
        in_specs=[
            pl.BlockSpec((tile_b, D), lambda i: (i, 0)),        # x batch tile
            pl.BlockSpec((D, H), lambda i: (0, 0)),             # W1 (resident)
            pl.BlockSpec((1, H), lambda i: (0, 0)),             # b1
            pl.BlockSpec((1, H), lambda i: (0, 0)),             # W2 as a row
            pl.BlockSpec(memory_space=pltpu.MemorySpace.SMEM),  # b2 scalar
        ],
        out_specs=pl.BlockSpec((1, 1, tile_b), lambda i: (i, 0, 0)),
        compiler_params=pltpu.CompilerParams(
            dimension_semantics=("parallel",),
            vmem_limit_bytes=vmem_limit_bytes,
        ),
    )(x, w1, b1_2d, w2_row, b2_2d)

    # Lane-dense (num_tiles, 1, tile_b) slab -> (B, 1); padded tail (if any)
    # from ragged batches is dropped.  Pure layout plumbing.
    return out.reshape(-1)[:B].reshape(B, 1)


def clf_head_ref(x, w1, b1, w2, b2):
    h = jnp.maximum(
        jnp.dot(x, w1, precision=jax.lax.Precision.HIGHEST) + b1, 0.0)
    return jnp.dot(h, w2, precision=jax.lax.Precision.HIGHEST) + b2


if __name__ == "__main__":
    # Small shapes consistent with ClfHead(input_dim=200): hidden=100, out=1.
    batch, input_dim = 64, 200
    hidden = input_dim // 2

    key = jax.random.PRNGKey(0)
    kx, kw1, kb1, kw2, kb2 = jax.random.split(key, 5)

    x = jax.random.normal(kx, (batch, input_dim), dtype=jnp.float32)
    # PyTorch stores Linear weights as (out, in); here they are passed (in, out).
    w1 = jax.random.normal(kw1, (input_dim, hidden), dtype=jnp.float32) * 0.1
    b1 = jax.random.normal(kb1, (hidden,), dtype=jnp.float32) * 0.1
    w2 = jax.random.normal(kw2, (hidden, 1), dtype=jnp.float32) * 0.1
    b2 = jax.random.normal(kb2, (1,), dtype=jnp.float32) * 0.1

    out = clf_head(x, w1, b1, w2, b2)
    out = jax.block_until_ready(out)

    ref = clf_head_ref(x, w1, b1, w2, b2)
    assert out.shape == (batch, 1), out.shape
    assert jnp.allclose(out, ref, atol=1e-4, rtol=1e-4), (
        float(jnp.max(jnp.abs(out - ref))))

    print("KERNEL_OK")
</pallas_src>

<mosaic_0001>
module attributes {stable_mosaic.version = 11 : i64} {
  func.func @clf_head_kernel(%arg0: i32, %arg1: memref<32x200xf32, #tpu.memory_space<vmem>>, %arg2: memref<200x100xf32, #tpu.memory_space<vmem>>, %arg3: memref<1x100xf32, #tpu.memory_space<vmem>>, %arg4: memref<1x100xf32, #tpu.memory_space<vmem>>, %arg5: memref<1x1xf32, #tpu.memory_space<smem>>, %arg6: memref<1x1x32xf32, #tpu.memory_space<vmem>>) attributes {dimension_semantics = [#tpu.dimension_semantics<parallel>], iteration_bounds = array<i64: 2>, scalar_prefetch = 0 : i64, scratch_operands = 0 : i64, tpu.core_type = #tpu.core_type<tc>, window_params = [{transform_indices = @transform_0, window_bounds = array<i64: 32, 200>}, {pipeline_mode = #tpu.pipeline_mode<synchronous>, transform_indices = @transform_1, window_bounds = array<i64: 200, 100>}, {pipeline_mode = #tpu.pipeline_mode<synchronous>, transform_indices = @transform_2, window_bounds = array<i64: 1, 100>}, {pipeline_mode = #tpu.pipeline_mode<synchronous>, transform_indices = @transform_3, window_bounds = array<i64: 1, 100>}, {transform_indices = @transform_4, window_bounds = array<i64: 1, 1>}, {transform_indices = @transform_5, window_bounds = array<i64: 1, 1, 32>}]} {
    %c0 = arith.constant 0 : index
    %c0_0 = arith.constant 0 : index
    %0 = vector.load %arg1[%c0, %c0_0] : memref<32x200xf32, #tpu.memory_space<vmem>>, vector<32x200xf32>
    %c0_1 = arith.constant 0 : index
    %c0_2 = arith.constant 0 : index
    %1 = vector.load %arg2[%c0_1, %c0_2] : memref<200x100xf32, #tpu.memory_space<vmem>>, vector<200x100xf32>
    %cst = arith.constant dense<0.000000e+00> : vector<32x100xf32>
    %2 = tpu.matmul %0, %1, %cst {dimension_numbers = #tpu.dot_dimension_numbers<[1], [0], [0], [1], [0, 0, 1, 1], [], []>} : vector<32x200xf32>, vector<200x100xf32>, vector<32x100xf32> -> vector<32x100xf32>
    %c0_3 = arith.constant 0 : index
    %c0_4 = arith.constant 0 : index
    %3 = vector.load %arg3[%c0_3, %c0_4] : memref<1x100xf32, #tpu.memory_space<vmem>>, vector<1x100xf32>
    %4 = vector.broadcast %3 : vector<1x100xf32> to vector<32x100xf32>
    %5 = arith.addf %2, %4 : vector<32x100xf32>
    %cst_5 = arith.constant 0.000000e+00 : f32
    %6 = vector.broadcast %cst_5 : f32 to vector<32x100xf32>
    %7 = arith.maximumf %5, %6 : vector<32x100xf32>
    %c0_6 = arith.constant 0 : index
    %c0_7 = arith.constant 0 : index
    %8 = vector.load %arg4[%c0_6, %c0_7] : memref<1x100xf32, #tpu.memory_space<vmem>>, vector<1x100xf32>
    %cst_8 = arith.constant dense<0.000000e+00> : vector<1x32xf32>
    %9 = tpu.matmul %8, %7, %cst_8 {dimension_numbers = #tpu.dot_dimension_numbers<[1], [1], [0], [0], [0, 0, 1, 0], [], []>} : vector<1x100xf32>, vector<32x100xf32>, vector<1x32xf32> -> vector<1x32xf32>
    %c0_9 = arith.constant 0 : index
    %c0_10 = arith.constant 0 : index
    %10 = memref.load %arg5[%c0_9, %c0_10] : memref<1x1xf32, #tpu.memory_space<smem>>
    %11 = vector.broadcast %10 : f32 to vector<1x32xf32>
    %12 = arith.addf %9, %11 : vector<1x32xf32>
    %13 = vector.shape_cast %12 : vector<1x32xf32> to vector<1x1x32xf32>
    %c0_11 = arith.constant 0 : index
    %c0_12 = arith.constant 0 : index
    %c0_13 = arith.constant 0 : index
    %14 = vector.load %arg6[%c0_11, %c0_12, %c0_13] : memref<1x1x32xf32, #tpu.memory_space<vmem>>, vector<1x1x32xf32>
    tpu.vector_store %arg6[%c0_11, %c0_12, %c0_13], %13 {strides = array<i32>} : memref<1x1x32xf32, #tpu.memory_space<vmem>>, vector<1x1x32xf32>,
    return
  }
  func.func @transform_0(%arg0: i32) -> (i32, i32) {
    %c0_i32 = arith.constant 0 : i32
    %c0_i32_0 = arith.constant 0 : i32
    return %arg0, %c0_i32 : i32, i32
  }
  func.func @transform_1(%arg0: i32) -> (i32, i32) {
    %c0_i32 = arith.constant 0 : i32
    %c0_i32_0 = arith.constant 0 : i32
    %c0_i32_1 = arith.constant 0 : i32
    return %c0_i32, %c0_i32_0 : i32, i32
  }
  func.func @transform_2(%arg0: i32) -> (i32, i32) {
    %c0_i32 = arith.constant 0 : i32
    %c0_i32_0 = arith.constant 0 : i32
    %c0_i32_1 = arith.constant 0 : i32
    return %c0_i32, %c0_i32_0 : i32, i32
  }
  func.func @transform_3(%arg0: i32) -> (i32, i32) {
    %c0_i32 = arith.constant 0 : i32
    %c0_i32_0 = arith.constant 0 : i32
    %c0_i32_1 = arith.constant 0 : i32
    return %c0_i32, %c0_i32_0 : i32, i32
  }
  func.func @transform_4(%arg0: i32) -> (i32, i32) {
    %c0_i32 = arith.constant 0 : i32
    %c0_i32_0 = arith.constant 0 : i32
    %c0_i32_1 = arith.constant 0 : i32
    return %c0_i32, %c0_i32_0 : i32, i32
  }
  func.func @transform_5(%arg0: i32) -> (i32, i32, i32) {
    %c0_i32 = arith.constant 0 : i32
    %c0_i32_0 = arith.constant 0 : i32
    %c0_i32_1 = arith.constant 0 : i32
    return %arg0, %c0_i32, %c0_i32_0 : i32, i32, i32
  }
}

</mosaic_0001>

<bundles_post_ra>
// kernel: tpu_custom_call.1
= control target key start
LH: loop header
LB: loop body
LE: loop exit
PB: predicated region body
PF: predicated region fallthrough
CT: control target
= control target key end

     0   :  { %s1078_s0 = inlined_call_operand.hbm [shape: f32[64,200], index: 0, kind: input, shape index: {}]   ;;  %s1079_s1 = inlined_call_operand.hbm [shape: f32[200,100], index: 1, kind: input, shape index: {}]   ;;  %s1080_s2 = inlined_call_operand.vmem [shape: f32[1,100], index: 2, kind: input, shape index: {}]   ;;  %s1081_s3 = inlined_call_operand.vmem [shape: f32[1,100], index: 3, kind: input, shape index: {}]   ;;  %s1082_s4 = inlined_call_operand.<no memory space> [shape: f32[1,1], index: 4, kind: input, shape index: {}]   ;;  %s1083_s5 = inlined_call_operand.hbm [shape: f32[2,1,32], index: 5, kind: output, shape index: {}]  }
   0x1   :  { %10 = sst [smem:[#allocation2]] %s1082_s4 }
   0x2   :  { %11 = vsyncpa [#allocation4], 0 }
   0x3   :  { %13 = vsyncpa [#allocation4 + $0x1], 0 }
   0x4   :  { %14 = vsyncpa [#allocation7], 0 }
   0x5   :  { %15 = vsyncpa [#allocation5], 0 }
   0x6   :  { %17 = vsyncpa [#allocation5 + $0x1], 0  ;;  %s853_s20 = smov 0   ;;  %s855_s21 = smov 0  }
   0x7   :  { %s857_s22 = smov 0   ;;  %s859_s23 = smov 0  }
   0x8 LB: > { %s874_s4 = sadd.s32 4294967295, %s809_s23   ;;  %s582_s24 = sadd.s32 4294967294, %s809_s23   ;;  %s809_s23 = sphi %s859_s23, %s1105_s23   ;;  %s805_s22 = sphi %s857_s22, %s1104_s22   ;;  %s801_s21 = sphi %s855_s21, %s1103_s21   ;;  %s797_s20 = sphi %s853_s20, %s1102_s20  }
   0x9   : > { %p43_p0 = scmp.ne.s32.totalorder %s801_s21, %s797_s20  ;;  %p1084_p1 = scmp.eq.s32.totalorder %s874_s4, 0 }
   0xa   : > { %p157_p3 = scmp.eq.s32.totalorder %s582_s24, 1  ;;  %p583_p5 = scmp.ge.s32.totalorder %s809_s23, 1 }
   0xb   : > { %p883_p4 = por %p1084_p1, %p43_p0  ;;  %p164_p7 = scmp.lt.s32.totalorder %s809_s23, 3 }
   0xc   : > { %p888_p6 = por %p157_p3, %p43_p0  ;;  %s811_s28 = smov [#allocation6]  }
   0xd   : > { %s1088_s25 = scalar_select %p883_p4, 1, 0 }
   0xe   : > { %s1089_s26 = scalar_select %p888_p6, 1, 0 }
   0xf   : > { %p893_p8 = pnand %p583_p5, %p164_p7  ;;  %s176_s29 = sshll.u32 %s811_s28, 4  ;;  %s177_s29 = int_to_ptr.vmem [resolvable:$true] %s176_s29 }
  0x10   : > { %s907_s6 = sadd.s32 1, %s809_s23   ;;  %s30_s7 = sadd.s32 1, %s805_s22 }
  0x11   : > { %s1090_s27 = scalar_select %p893_p8, 1, 0 }
  0x12   : > { %p632_p9 = pneg %p893_p8  ;;  %s27_s8 = ssub.s32 %s809_s23, %s907_s6 }
  0x13   : > { %s698_s9 = scalar_lea.vmem %s177_s29, 3200  ;;  %p706_p5 = scmp.lt.s32.totalorder %s177_s29, %s177_s29 }
  0x14   : > { %p902_p11 = pnand %p632_p9, %p1084_p1  ;;  %p699_p13 = scmp.ne.s32.totalorder %s177_s29, %s698_s9 }
  0x15   : > { %p707_p7 = scmp.lt.s32.totalorder %s698_s9, %s698_s9 }
  0x16   : > { %p689_p12 = pneg %p902_p11 }
  0x17   : > { %p708_p10 = por %p707_p7, %p706_p5 }
  0x18   : > { %p701_p0 = pnand %p699_p13, %p689_p12 }
  0x1a   : > { %p702_p3 = pneg %p701_p0 }
  0x1c   : > { %p709_p2 = pnand %p708_p10, %p702_p3 }
  0x1e   : > { %712 = shalt.err (!%p709_p2)
}
  0x1f   : > { %s812_s10 = smov 128   ;;  %s813_s11 = smov 8  }
  0x20   : > { %635 = dma.hbm_to_vmem [thread:$0]  (!%p902_p11), %s1079_s1, 3200, %s177_s29, [#allocation7], %s812_s10, %s812_s10, %s813_s11  }
  0x21   : > { %p28_p9 = scmp.eq.s32.totalorder %s27_s8, 0  ;;  %p37_p12 = scmp.ne.s32.totalorder %s805_s22, %s801_s21 }
  0x22   : > { %p38_p10 = scmp.eq.s32.totalorder %s809_s23, 0  ;;  %p645_p2 = scmp.lt.s32.totalorder %s809_s23, 2 }
  0x23   : > { %s924_s14 = scalar_select %p28_p9, %s805_s22, %s30_s7  }
  0x24   : > { %p39_p13 = por %p38_p10, %p37_p12  ;;  %p1092_p0 = scmp.eq.s32.totalorder %s874_s4, 1 }
  0x25   : > { %s199_s16 = sand.u32 1, %s805_s22   ;;  %s607_s17 = sshll.u32 %s809_s23, 10 }
  0x26   : > { %p928_p3 = por %p1092_p0, %p37_p12  ;;  %s586_s18 = sshll.u32 %s199_s16, 6 }
  0x27   : > { %s937_s28 = scalar_lea.hbm %s1078_s0, %s607_s17  ;;  %s203_s29 = scalar_lea.vmem [#allocation3], %s586_s18 }
  0x28   : > { %s1093_s15 = scalar_select %p928_p3, 1, 0 }
  0x29   : > { %s211_s30 = sshll.u32 %s203_s29, 4  ;;  %p939_p11 = pnand %p645_p2, %p39_p13  ;;  %s943_s30 = int_to_ptr.vmem [resolvable:$true] %s211_s30 }
  0x2a   : > { %s945_s8 = scalar_lea.sflag [#allocation4], %s199_s16  ;;  %s713_s9 = scalar_lea.hbm %s937_s28, 1024 }
  0x2b   : > { %p714_p5 = scmp.ne.s32.totalorder %s937_s28, %s713_s9  ;;  %p715_p7 = pneg %p939_p11 }
  0x2c   : > { %s718_s12 = scalar_lea.hbm %s1078_s0, 2048  ;;  %p719_p10 = scmp.lt.s32.totalorder %s937_s28, %s1078_s0 }
  0x2d   : > { %p716_p9 = pnand %p715_p7, %p714_p5  ;;  %p720_p2 = scmp.lt.s32.totalorder %s718_s12, %s713_s9 }
  0x2f   : > { %p717_p12 = pneg %p716_p9  ;;  %p721_p13 = por %p720_p2, %p719_p10 }
  0x31   : > { %p722_p0 = pnand %p721_p13, %p717_p12 }
  0x33   : > { %725 = shalt.err (!%p722_p0)
}
  0x34   : > { %s726_s16 = scalar_lea.vmem %s943_s30, 1024  ;;  %s814_s18 = smov [#allocation3]  }
  0x35   : > { %p727_p1 = scmp.ne.s32.totalorder %s943_s30, %s726_s16  ;;  %s731_s19 = sshll.u32 %s814_s18, 4  ;;  %s732_s19 = int_to_ptr.vmem [resolvable:$false] %s731_s19 }
  0x36   : > { %s733_s24 = scalar_lea.vmem %s732_s19, 2048  ;;  %p734_p9 = scmp.lt.s32.totalorder %s943_s30, %s732_s19 }
  0x37   : > { %p729_p6 = pnand %p727_p1, %p715_p7  ;;  %p735_p3 = scmp.lt.s32.totalorder %s733_s24, %s726_s16 }
  0x39   : > { %p730_p5 = pneg %p729_p6  ;;  %p736_p4 = por %p735_p3, %p734_p9 }
  0x3b   : > { %p737_p8 = pnand %p736_p4, %p730_p5 }
  0x3d   : > { %740 = shalt.err (!%p737_p8)
}
  0x3e   : > { %s815_s29 = smov 256   ;;  %s816_s9 = smov 16  }
  0x3f   : > { %639 = dma.hbm_to_vmem [thread:$0]  (!%p939_p11), %s937_s28, 1024, %s943_s30, %s945_s8, %s815_s29, %s815_s29, %s816_s9  }
  0x40   : > { %p1095_p1 = scmp.ne.s32.totalorder %s1090_s27, 0 }
  0x41   : > { %s969_s10 = sand.u32 (!%p1095_p1), 1, %s801_s21   ;;  %p1096_p4 = scmp.ne.s32.totalorder (!%p1095_p1), %s1088_s25, 0 }
  0x42   : > { %223 = sbr.rel (%p1095_p1) target bundleno = 558 (0x22e), region = 40  ;;  %s591_s11 = sshll.u32 (!%p1095_p1), %s969_s10, 6 }
  0x43   : > { %s226_s12 = scalar_lea.sflag (!%p1095_p1), [#allocation4], %s969_s10  ;;  %s973_s13 = scalar_lea.vmem (!%p1095_p1), [#allocation3], %s591_s11 }
  0x47   : > { %784 = dma.done.wait (%p1096_p4), %s226_s12, 1024  }
  0x48   : > { %786 = vsyncadd (%p1096_p4), %s226_s12, 4294966272  ;;  %p1097_p6 = scmp.eq.s32.totalorder %s874_s4, 0 }
  0x4a   : > { %788 = dma.done.wait (%p1097_p6), [#allocation7], 3200   ;;  %p1098_p8 = pmov %p1097_p6 }
  0x4b   : > { %v817_v0 = vmov 0.0   ;;  %v283_v1 = vld [vmem:[#allocation6 + $0x78] sm:$0xff]  ;;  %v282_v2 = vld [vmem:[#allocation6 + $0x70] sm:$0xff]  ;;  %v281_v3 = vld [vmem:[#allocation6 + $0x68] sm:$0xff]  ;;  %vm300_vm0 = vcmask 588800   ;;  %vm818_vm1 = vmmov 0  }
  0x4c   : > { %790 = vsyncadd (%p1098_p8), [#allocation7], 4294964096  ;;  %313 = vmatprep.subr.mxu0 %v817_v0  ;;  %613 = vmatprep.subr.mxu1 %v817_v0  ;;  %v280_v4 = vld [vmem:[#allocation6 + $0x60] sm:$0xff]  ;;  %v279_v5 = vld [vmem:[#allocation6 + $0x58] sm:$0xff]  ;;  %vm405_vm2 = vcmask 818176   ;;  %s403_s7 = sld [smem:[#allocation2]] }
  0x4d   : > { %314 = vmatpush1.msra.mxu0 %v283_v1  ;;  %v278_v6 = vld [vmem:[#allocation6 + $0x50] sm:$0xff]  ;;  %v261_v7 = vld [vmem:[%s973_s13 + $0x8] sm:$0xff]  ;;  %v276_v9 = vld [vmem:[#allocation6 + $0x40] sm:$0xff]  ;;  %621 = vmatprep.mubr.msk.f32.mxu1 %vm818_vm1, %v817_v0  ;;  %s603_s8 = sshll.u32 %s874_s4, 4  ;;  %s258_s17 = scalar_lea.vmem [#allocation8], %s969_s10  ;;  %vm491_vm3 = vcmask 253952  }
  0x4e   : > { %315 = vmatprep.subr.mxu0 %v817_v0  ;;  %594 = vmatprep.mubr.msk.f32.mxu0 %vm300_vm0, %v261_v7  ;;  %v277_v8 = vld [vmem:[#allocation6 + $0x48] sm:$0xff]  ;;  %v275_v10 = vld [vmem:[#allocation6 + $0x38] sm:$0xff]  ;;  %v274_v11 = vld [vmem:[#allocation6 + $0x30] sm:$0xff]  ;;  %s506_s16 = sshll.u32 %s258_s17, 4  ;;  %s1041_s24 = scalar_lea.hbm %s1083_s5, %s603_s8  ;;  %s507_s16 = int_to_ptr.vmem [resolvable:$true] %s506_s16 }
  0x4f   : > { %316 = vmatpush1.msra.mxu0 %v282_v2  ;;  %v273_v12 = vld [vmem:[#allocation6 + $0x28] sm:$0xff]  ;;  %v272_v13 = vld [vmem:[#allocation6 + $0x20] sm:$0xff]  ;;  %v271_v14 = vld [vmem:[#allocation6 + $0x18] sm:$0xff]  ;;  %s494_s29 = scalar_lea.sflag [#allocation5], %s969_s10  ;;  %s741_s9 = scalar_lea.vmem %s507_s16, 16 }
  0x50   : > { %317 = vmatprep.subr.mxu0 %v817_v0  ;;  %v270_v15 = vld [vmem:[#allocation6 + $0x10] sm:$0xff]  ;;  %v269_v16 = vld [vmem:[#allocation6 + $0x8] sm:$0xff]  ;;  %v268_v17 = vld [vmem:[#allocation6] sm:$0xff]  ;;  %p742_p3 = scmp.ne.s32.totalorder %s507_s16, %s741_s9  ;;  %p1099_p11 = scmp.ne.s32.totalorder %s1093_s15, 0 }
  0x51   : > { %318 = vmatpush1.msra.mxu0 %v281_v3  ;;  %v292_v18 = vld [vmem:[#allocation6 + $0xc0] sm:$0xff]  ;;  %v291_v19 = vld [vmem:[#allocation6 + $0xb8] sm:$0xff]  ;;  %v290_v20 = vld [vmem:[#allocation6 + $0xb0] sm:$0xff]  ;;  %s819_s4 = smov [#allocation8]  }
  0x52   : > { %319 = vmatprep.subr.mxu0 %v817_v0  ;;  %v289_v21 = vld [vmem:[#allocation6 + $0xa8] sm:$0xff]  ;;  %v288_v22 = vld [vmem:[#allocation6 + $0xa0] sm:$0xff]  ;;  %v287_v23 = vld [vmem:[#allocation6 + $0x98] sm:$0xff]  ;;  %v404_v52 = vstv %s403_s7  ;;  %p743_p7 = pnand %p742_p3, %p1099_p11  ;;  %s745_s11 = sshll.u32 %s819_s4, 4  ;;  %s746_s11 = int_to_ptr.vmem [resolvable:$false] %s745_s11 }
  0x53   : > { %320 = vmatpush1.msra.mxu0 %v280_v4  ;;  %v286_v24 = vld [vmem:[#allocation6 + $0x90] sm:$0xff]  ;;  %v285_v25 = vld [vmem:[#allocation6 + $0x88] sm:$0xff]  ;;  %v284_v26 = vld [vmem:[#allocation6 + $0x80] sm:$0xff]  ;;  %s747_s12 = scalar_lea.vmem %s746_s11, 32  ;;  %p748_p10 = scmp.lt.s32.totalorder %s507_s16, %s746_s11 }
  0x54   : > { %321 = vmatprep.subr.mxu0 %v817_v0  ;;  %v260_v27 = vld [vmem:[%s973_s13] sm:$0xff]  ;;  %v263_v28 = vld [vmem:[%s973_s13 + $0x18] sm:$0xff]  ;;  %v262_v29 = vld [vmem:[%s973_s13 + $0x10] sm:$0xff]  ;;  %p744_p12 = pneg %p743_p7  ;;  %p749_p2 = scmp.lt.s32.totalorder %s747_s12, %s741_s9 }
  0x55   : > { %322 = vmatpush1.msra.mxu0 %v279_v5  ;;  %v265_v30 = vld [vmem:[%s973_s13 + $0x28] sm:$0xff]  ;;  %v264_v31 = vld [vmem:[%s973_s13 + $0x20] sm:$0xff]  ;;  %v267_v32 = vld [vmem:[%s973_s13 + $0x38] sm:$0xff] }
  0x56   : > { %323 = vmatprep.subr.mxu0 %v817_v0  ;;  %v266_v33 = vld [vmem:[%s973_s13 + $0x30] sm:$0xff]  ;;  %v593_v40 = vld [vmem:[%s1080_s2] ss:$0 sm:$0xff]  ;;  %p750_p13 = por %p749_p2, %p748_p10 }
  0x57   : > { %324 = vmatpush1.msra.mxu0 %v278_v6  ;;  %v402_v51 = vld [vmem:[%s1081_s3] sm:$0x1] }
  0x58   : > { %325 = vmatprep.subr.mxu0 %v817_v0  ;;  %p751_p0 = pnand %p750_p13, %p744_p12 }
  0x59   : > { %326 = vmatpush1.msra.mxu0 %v277_v8 }
  0x5a   : > { %327 = vmatprep.subr.mxu0 %v817_v0 }
  0x5b   : > { %328 = vmatpush1.msra.mxu0 %v276_v9 }
  0x5c   : > { %329 = vmatprep.subr.mxu0 %v817_v0 }
  0x5d   : > { %330 = vmatpush1.msra.mxu0 %v275_v10 }
  0x5e   : > { %331 = vmatprep.subr.mxu0 %v817_v0 }
  0x5f   : > { %332 = vmatpush1.msra.mxu0 %v274_v11 }
  0x60   : > { %333 = vmatprep.subr.mxu0 %v817_v0 }
  0x61   : > { %334 = vmatpush1.msra.mxu0 %v273_v12 }
  0x62   : > { %335 = vmatprep.subr.mxu0 %v817_v0 }
  0x63   : > { %336 = vmatpush1.msra.mxu0 %v272_v13 }
  0x64   : > { %337 = vmatprep.subr.mxu0 %v817_v0 }
  0x65   : > { %338 = vmatpush1.msra.mxu0 %v271_v14 }
  0x66   : > { %339 = vmatprep.subr.mxu0 %v817_v0 }
  0x67   : > { %340 = vmatpush1.msra.mxu0 %v270_v15 }
  0x68   : > { %341 = vmatprep.subr.mxu0 %v817_v0 }
  0x69   : > { %342 = vmatpush1.msra.mxu0 %v269_v16 }
  0x6a   : > { %343 = vmatprep.subr.mxu0 %v817_v0 }
  0x6b   : > { %344 = vmatpush1.msra.mxu0 %v268_v17 }
  0x6c   : > { %359 = vmatprep.subr.mxu0 %v817_v0 }
  0x6d   : > { %360 = vmatpush2.msra.mxu0 %v292_v18 }
  0x6e   : > { %361 = vmatprep.subr.mxu0 %v817_v0 }
  0x6f   : > { %362 = vmatpush2.msra.mxu0 %v291_v19 }
  0x70   : > { %363 = vmatprep.subr.mxu0 %v817_v0 }
  0x71   : > { %364 = vmatpush2.msra.mxu0 %v290_v20 }
  0x72   : > { %365 = vmatprep.subr.mxu0 %v817_v0 }
  0x73   : > { %366 = vmatpush2.msra.mxu0 %v289_v21 }
  0x74   : > { %367 = vmatprep.subr.mxu0 %v817_v0 }
  0x75   : > { %368 = vmatpush2.msra.mxu0 %v288_v22 }
  0x76   : > { %369 = vmatprep.subr.mxu0 %v817_v0 }
  0x77   : > { %370 = vmatpush2.msra.mxu0 %v287_v23 }
  0x78   : > { %371 = vmatprep.subr.mxu0 %v817_v0 }
  0x79   : > { %372 = vmatpush2.msra.mxu0 %v286_v24 }
  0x7a   : > { %373 = vmatprep.subr.mxu0 %v817_v0 }
  0x7b   : > { %374 = vmatpush2.msra.mxu0 %v285_v25 }
  0x7c   : > { %375 = vmatprep.subr.mxu0 %v817_v0 }
  0x7d   : > { %376 = vmatpush2.msra.mxu0 %v284_v26 }
  0x7e   : > { %378 = vmatmul.mubr.f32.vlgmr.msra.gmra.mxu0 %v260_v27 }
  0x7f   : > { %595 = vmatprep.mubr.msk.f32.mxu0 %vm300_vm0, %v263_v28 }
  0x82   : > { %383 = vmatmul.mubr.f32.gmra.mxu0 %v262_v29 }
  0x83   : > { %596 = vmatprep.mubr.msk.f32.mxu0 %vm300_vm0, %v265_v30 }
  0x86   : > { %388 = vmatmul.mubr.f32.gmra.mxu0 %v264_v31 }
  0x87   : > { %597 = vmatprep.mubr.msk.f32.mxu0 %vm300_vm0, %v267_v32 }
  0x8a   : > { %393 = vmatmul.mubr.f32.gmra.mxu0 %v266_v33 }
 0x13e   : > { %v379_v34 = vpop.f32.mrf.mxu0 }
 0x13f   : > { %v380_v48 = vadd.f32 %v593_v40, %v379_v34 }
 0x140   : > { %v381_v35 = vpop.f32.mrf.mxu0 }
 0x141   : > { %v398_v50 = vmax.f32 %v380_v48, 0.0 }
 0x142   : > { %v384_v36 = vpop.f32.mrf.mxu0 }
 0x143   : > { %v385_v46 = vadd.f32 %v593_v40, %v384_v36 }
 0x144   : > { %v386_v37 = vpop.f32.mrf.mxu0 }
 0x145   : > { %v399_v49 = vmax.f32 %v385_v46, 0.0 }
 0x146   : > { %v389_v38 = vpop.f32.mrf.mxu0 }
 0x147   : > { %v390_v44 = vadd.f32 %v593_v40, %v389_v38 }
 0x148   : > { %v391_v39 = vpop.f32.mrf.mxu0 }
 0x149   : > { %v400_v47 = vmax.f32 %v390_v44, 0.0 }
 0x14a   : > { %v394_v41 = vpop.f32.mrf.mxu0 }
 0x14b   : > { %v395_v42 = vadd.f32 %v593_v40, %v394_v41 }
 0x14c   : > { %v396_v43 = vpop.f32.mrf.mxu0 }
 0x14d   : > { %v401_v45 = vmax.f32 %v395_v42, 0.0 }
 0x14f   : > { %614 = vmatpush3.xpose.msk.msra.mxu1 %vm405_vm2, %v401_v45 }
 0x150   : > { %615 = vmatprep.subr.mxu1 %v817_v0 }
 0x153   : > { %616 = vmatpush3.xpose.msk.msra.mxu1 %vm405_vm2, %v400_v47 }
 0x154   : > { %617 = vmatprep.subr.mxu1 %v817_v0 }
 0x157   : > { %618 = vmatpush3.xpose.msk.msra.mxu1 %vm405_vm2, %v399_v49 }
 0x158   : > { %619 = vmatprep.subr.mxu1 %v817_v0 }
 0x15b   : > { %620 = vmatpush3.xpose.msk.msra.mxu1 %vm405_vm2, %v398_v50 }
 0x15e   : > { %622 = vmatmul.mubr.msk.f32.vlgmr.msra.gmra.mxu1 %vm405_vm2, %v402_v51 }
 0x21e   : > { %v487_v53 = vpop.f32.mrf.mxu1 }
 0x21f   : > { %v488_v54 = vadd.f32 %v487_v53, %v404_v52 }
 0x220   : > { %v623_v55 = vpop.f32.mrf.mxu1 }
 0x221   : > { %492 = vst.msk [vmem:[%s258_s17] sm:$0x1] %vm491_vm3, %v488_v54 }
 0x222   : > { %754 = shalt.err (!%p751_p0)
}
 0x223   : > { %s755_s13 = scalar_lea.hbm %s1041_s24, 16  ;;  %s759_s27 = scalar_lea.hbm %s1083_s5, 32 }
 0x224   : > { %p756_p5 = scmp.ne.s32.totalorder %s1041_s24, %s755_s13  ;;  %p760_p4 = scmp.lt.s32.totalorder %s1041_s24, %s1083_s5 }
 0x225   : > { %p761_p6 = scmp.lt.s32.totalorder %s759_s27, %s755_s13 }
 0x226   : > { %p757_p9 = pnand %p756_p5, %p1099_p11 }
 0x227   : > { %p762_p8 = por %p761_p6, %p760_p4 }
 0x228   : > { %p758_p1 = pneg %p757_p9 }
 0x22a   : > { %p763_p3 = pnand %p762_p8, %p758_p1 }
 0x22c   : > { %766 = shalt.err (!%p763_p3)
}
 0x22d   : > { %630 = dma.vmem_to_hbm [thread:$0]  (%p1099_p11), %s507_s16, 16, %s1041_s24, %s494_s29  }
 0x22e PF: > { %s518_s7 = sand.u32 1, %s797_s20   ;;  %p1100_p7 = scmp.ne.s32.totalorder %s1089_s26, 0 }
 0x22f   : > { %p1101_p12 = scmp.ge.s32.totalorder %s809_s23, 2  ;;  %s519_s8 = scalar_lea.sflag [#allocation5], %s518_s7 }
 0x231   : > { %p641_p10 = pnand %p1101_p12, %p1100_p7 }
 0x233   : > { %p642_p2 = pneg %p641_p10 }
 0x235   : > { %792 = dma.done.wait (%p642_p2), %s519_s8, 16  }
 0x236   : > { %794 = vsyncadd (%p642_p2), %s519_s8, 4294967280  ;;  %p20_p13 = scmp.ge.s32.totalorder %s907_s6, 4   ;;  %s1102_s20 = smov %s801_s21 }
 0x237   : > { %s1103_s21 = smov %s805_s22  ;;  %s1104_s22 = smov %s924_s14 }
 0x238   : > { %s1105_s23 = smov %s907_s6  ;;  %22 = sbr.rel (!%p20_p13) target bundleno = 8 (0x8), region = 89 }
 0x23d   :  { %523 = vsyncpa [#allocation4], 1 }
 0x23e   :  { %525 = vsyncpa [#allocation4 + $0x1], 1 }
 0x23f   :  { %526 = vsyncpa [#allocation7], 1 }
 0x240   :  { %527 = vsyncpa [#allocation5], 1 }
 0x241   :  { %529 = vsyncpa [#allocation5 + $0x1], 1 }

</bundles_post_ra>
